<compile_context>
chip_gen: v7x
topology: tpu7x:2x2x1
jax: 0.10.0
libtpu: 0.0.40
codegen_flags: <defaults>
</compile_context>

<pallas_src>
import functools

import jax
import jax.numpy as jnp
from jax.experimental import pallas as pl
from jax.experimental.pallas import tpu as pltpu


def _round_up(x, m):
    return (x + m - 1) // m * m


def _self_output_kernel(h_ref, x_ref, w_ref, p_ref, o_ref, *, eps, matmul_dtype):
    # dense: y = h @ W  with W pre-transposed to [H_in, H_out]; bf16 operands,
    # f32 accumulation on the MXU.
    h = h_ref[...].astype(matmul_dtype)
    w = w_ref[...]                                   # [K, N], already matmul_dtype
    y = jnp.dot(h, w, preferred_element_type=jnp.float32)

    p = p_ref[...].astype(jnp.float32)               # packed (8, H): bias/gamma/beta
    bias = p[0:1, :]
    gamma = p[1:2, :]
    beta = p[2:3, :]

    # TODO(synk): dropout is identity in eval mode; training-mode masking would need
    # pltpu.prng_seed / pltpu.prng_random_bits before the residual add.

    # bias + residual add in f32
    y = y + bias + x_ref[...].astype(jnp.float32)

    # LayerNorm over the hidden (last) dim — two-pass statistics in f32.
    inv_h = jnp.float32(1.0 / y.shape[-1])
    mean = jnp.sum(y, axis=-1, keepdims=True) * inv_h
    centered = y - mean
    var = jnp.sum(centered * centered, axis=-1, keepdims=True) * inv_h
    norm = centered * jax.lax.rsqrt(var + eps)
    out = norm * gamma + beta

    o_ref[...] = out.astype(o_ref.dtype)


def prepare_sbert_self_output_params(weight, bias, gamma, beta,
                                     *, matmul_dtype=jnp.bfloat16):
    """One-time (parameter-load-time) prep.

    weight: PyTorch nn.Linear layout [H_out, H_in]  -> transposed to [H_in, H_out]
            and cast to the MXU dtype.
    bias/gamma/beta: packed into a single (8, H) f32 slab (rows 0/1/2 used).
    """
    H = weight.shape[0]
    w_mm = jnp.asarray(weight).T.astype(matmul_dtype)
    params = jnp.zeros((8, H), jnp.float32)
    params = params.at[0].set(jnp.asarray(bias, jnp.float32))
    params = params.at[1].set(jnp.asarray(gamma, jnp.float32))
    params = params.at[2].set(jnp.asarray(beta, jnp.float32))
    return w_mm, params


def sbert_self_output(hidden_states, input_tensor, w_mm, params,
                      *, eps=1e-12, row_tile=256):
    """hidden_states, input_tensor: [B, S, H] (any float dtype; pass bf16 to halve
    HBM traffic). w_mm/params come from prepare_sbert_self_output_params."""
    B, S, H = hidden_states.shape
    rows = B * S

    h2 = hidden_states.reshape(rows, H)
    x2 = input_tensor.reshape(rows, H)
    matmul_dtype = w_mm.dtype

    # dtype-aware sublane rounding (f32: 8 rows/vreg, bf16: 16, int8/fp8: 32)
    in_itemsize = jnp.dtype(hidden_states.dtype).itemsize
    rnd = 8 if in_itemsize >= 4 else (16 if in_itemsize == 2 else 32)

    # Biggest tile <= row_tile, but keep >= 2 grid steps when rows allow so the
    # parallel axis shards across both v7x TensorCores.
    tile = max(rnd, min(_round_up(row_tile, rnd), _round_up(pl.cdiv(rows, 2), rnd)))
    grid = (pl.cdiv(rows, tile),)                    # ragged last tile handled by Pallas

    kernel = functools.partial(_self_output_kernel, eps=float(eps),
                               matmul_dtype=matmul_dtype)

    out_itemsize = in_itemsize
    mm_itemsize = jnp.dtype(matmul_dtype).itemsize
    cost = pl.CostEstimate(
        flops=int(2 * rows * H * H),
        transcendentals=int(rows),                    # rsqrt per row
        bytes_accessed=int(
            h2.size * in_itemsize + x2.size * in_itemsize
            + H * H * mm_itemsize + rows * H * out_itemsize + 8 * H * 4
        ),
    )

    # VMEM working set: double-buffered activations/output, single-buffered weight.
    vmem_est = (2 * 2 * tile * H * in_itemsize       # h, x (2 bufs each)
                + 2 * tile * H * out_itemsize        # out (2 bufs)
                + H * H * mm_itemsize                # weight (1 buf)
                + 8 * H * 4)                         # packed params
    vmem_limit = int(min(100 << 20, 2 * vmem_est)) if vmem_est > (16 << 20) else None

    out2 = pl.pallas_call(
        kernel,
        out_shape=jax.ShapeDtypeStruct((rows, H), hidden_states.dtype),
        grid_spec=pltpu.PrefetchScalarGridSpec(
            num_scalar_prefetch=0,
            grid=grid,
            in_specs=[
                pl.BlockSpec((tile, H), lambda i: (i, 0)),   # hidden_states tile
                pl.BlockSpec((tile, H), lambda i: (i, 0)),   # residual tile
                pl.BlockSpec((H, H), lambda i: (0, 0),       # weight [K, N], resident
                             pipeline_mode=pl.Buffered(1)),
                pl.BlockSpec((8, H), lambda i: (0, 0),       # packed bias/gamma/beta
                             pipeline_mode=pl.Buffered(1)),
            ],
            out_specs=pl.BlockSpec((tile, H), lambda i: (i, 0)),
        ),
        compiler_params=pltpu.CompilerParams(
            dimension_semantics=("parallel",),
            vmem_limit_bytes=vmem_limit,
        ),
        cost_estimate=cost,
    )(h2, x2, w_mm, params)

    return out2.reshape(B, S, H)


def _ref_forward(h, x, weight, bias, gamma, beta, eps, mm_dtype=None):
    """PyTorch-equivalent reference; optionally emulate bf16-operand matmul."""
    if mm_dtype is not None:
        y = jnp.einsum("bsh,oh->bso", h.astype(mm_dtype), weight.astype(mm_dtype),
                       preferred_element_type=jnp.float32) + bias
    else:
        y = jnp.einsum("bsh,oh->bso", h, weight) + bias
    y = y + x
    mean = jnp.mean(y, axis=-1, keepdims=True)
    var = jnp.mean((y - mean) ** 2, axis=-1, keepdims=True)
    return (y - mean) / jnp.sqrt(var + eps) * gamma + beta


if __name__ == "__main__":
    H = 32
    eps = 1e-12
    key = jax.random.PRNGKey(0)
    k_h, k_x, k_w, k_b, k_g, k_be = jax.random.split(key, 6)

    # nn.Linear(H, H): weight [H_out, H_in], bias [H]; nn.LayerNorm(H): gamma/beta [H]
    weight = jax.random.normal(k_w, (H, H), dtype=jnp.float32) * (1.0 / jnp.sqrt(H))
    bias = 0.02 * jax.random.normal(k_b, (H,), dtype=jnp.float32)
    gamma = 1.0 + 0.1 * jax.random.normal(k_g, (H,), dtype=jnp.float32)
    beta = 0.1 * jax.random.normal(k_be, (H,), dtype=jnp.float32)

    # One-time parameter prep (transpose + bf16 cast + packing) — load-time, not per call.
    w_mm, params = prepare_sbert_self_output_params(weight, bias, gamma, beta)

    # Second shape exercises the ragged (masked) last row tile — no host pad/slice.
    for (B, S) in [(2, 8), (2, 9)]:
        hidden_states = jax.random.normal(k_h, (B, S, H), dtype=jnp.float32)
        input_tensor = jax.random.normal(k_x, (B, S, H), dtype=jnp.float32)

        out = sbert_self_output(hidden_states, input_tensor, w_mm, params, eps=eps)
        jax.block_until_ready(out)

        # Tight check vs bf16-operand / f32-accumulate emulated reference.
        ref_bf = _ref_forward(hidden_states, input_tensor, weight, bias, gamma, beta,
                              eps, mm_dtype=jnp.bfloat16)
        assert jnp.allclose(out, ref_bf, atol=1e-2, rtol=1e-2), ("bf16-ref", B, S)

        # Loose check vs full-f32 PyTorch-equivalent forward.
        ref_f32 = _ref_forward(hidden_states, input_tensor, weight, bias, gamma, beta, eps)
        assert jnp.allclose(out, ref_f32, atol=5e-2, rtol=5e-2), ("f32-ref", B, S)

    print("KERNEL_OK")
</pallas_src>

<mosaic_0001>
module attributes {stable_mosaic.version = 11 : i64} {
  func.func @_self_output_kernel(%arg0: i32, %arg1: memref<8x32xf32, #tpu.memory_space<vmem>>, %arg2: memref<8x32xf32, #tpu.memory_space<vmem>>, %arg3: memref<32x32xbf16, #tpu.memory_space<vmem>>, %arg4: memref<8x32xf32, #tpu.memory_space<vmem>>, %arg5: memref<8x32xf32, #tpu.memory_space<vmem>>) attributes {dimension_semantics = [#tpu.dimension_semantics<parallel>], iteration_bounds = array<i64: 2>, scalar_prefetch = 0 : i64, scratch_operands = 0 : i64, tpu.core_type = #tpu.core_type<tc>, window_params = [{transform_indices = @transform_0, window_bounds = array<i64: 8, 32>}, {transform_indices = @transform_1, window_bounds = array<i64: 8, 32>}, {pipeline_mode = #tpu.pipeline_mode<synchronous>, transform_indices = @transform_2, window_bounds = array<i64: 32, 32>}, {pipeline_mode = #tpu.pipeline_mode<synchronous>, transform_indices = @transform_3, window_bounds = array<i64: 8, 32>}, {transform_indices = @transform_4, window_bounds = array<i64: 8, 32>}]} {
    %c0 = arith.constant 0 : index
    %c0_0 = arith.constant 0 : index
    %0 = vector.load %arg1[%c0, %c0_0] : memref<8x32xf32, #tpu.memory_space<vmem>>, vector<8x32xf32>
    %1 = arith.truncf %0 : vector<8x32xf32> to vector<8x32xbf16>
    %c0_1 = arith.constant 0 : index
    %c0_2 = arith.constant 0 : index
    %2 = vector.load %arg3[%c0_1, %c0_2] : memref<32x32xbf16, #tpu.memory_space<vmem>>, vector<32x32xbf16>
    %cst = arith.constant dense<0.000000e+00> : vector<8x32xf32>
    %3 = tpu.matmul %1, %2, %cst {dimension_numbers = #tpu.dot_dimension_numbers<[1], [0], [0], [1], [0, 0, 1, 1], [], []>} : vector<8x32xbf16>, vector<32x32xbf16>, vector<8x32xf32> -> vector<8x32xf32>
    %c0_3 = arith.constant 0 : index
    %c0_4 = arith.constant 0 : index
    %4 = vector.load %arg4[%c0_3, %c0_4] : memref<8x32xf32, #tpu.memory_space<vmem>>, vector<8x32xf32>
    %5 = vector.extract_strided_slice %4 {offsets = [0, 0], sizes = [1, 32], strides = [1, 1]} : vector<8x32xf32> to vector<1x32xf32>
    %6 = vector.extract_strided_slice %4 {offsets = [1, 0], sizes = [1, 32], strides = [1, 1]} : vector<8x32xf32> to vector<1x32xf32>
    %7 = vector.extract_strided_slice %4 {offsets = [2, 0], sizes = [1, 32], strides = [1, 1]} : vector<8x32xf32> to vector<1x32xf32>
    %8 = vector.broadcast %5 : vector<1x32xf32> to vector<8x32xf32>
    %9 = arith.addf %3, %8 : vector<8x32xf32>
    %c0_5 = arith.constant 0 : index
    %c0_6 = arith.constant 0 : index
    %10 = vector.load %arg2[%c0_5, %c0_6] : memref<8x32xf32, #tpu.memory_space<vmem>>, vector<8x32xf32>
    %11 = arith.addf %9, %10 : vector<8x32xf32>
    %cst_7 = arith.constant dense<0.000000e+00> : vector<8xf32>
    %12 = vector.multi_reduction <add>, %11, %cst_7 [1] : vector<8x32xf32> to vector<8xf32>
    %13 = vector.shape_cast %12 : vector<8xf32> to vector<8x1xf32>
    %cst_8 = arith.constant 3.125000e-02 : f32
    %14 = vector.broadcast %cst_8 : f32 to vector<8x1xf32>
    %15 = arith.mulf %13, %14 : vector<8x1xf32>
    %16 = vector.broadcast %15 : vector<8x1xf32> to vector<8x32xf32>
    %17 = arith.subf %11, %16 : vector<8x32xf32>
    %18 = arith.mulf %17, %17 : vector<8x32xf32>
    %cst_9 = arith.constant dense<0.000000e+00> : vector<8xf32>
    %19 = vector.multi_reduction <add>, %18, %cst_9 [1] : vector<8x32xf32> to vector<8xf32>
    %20 = vector.shape_cast %19 : vector<8xf32> to vector<8x1xf32>
    %cst_10 = arith.constant 3.125000e-02 : f32
    %21 = vector.broadcast %cst_10 : f32 to vector<8x1xf32>
    %22 = arith.mulf %20, %21 : vector<8x1xf32>
    %cst_11 = arith.constant 9.99999996E-13 : f32
    %23 = vector.broadcast %cst_11 : f32 to vector<8x1xf32>
    %24 = arith.addf %22, %23 : vector<8x1xf32>
    %25 = math.rsqrt %24 : vector<8x1xf32>
    %26 = vector.broadcast %25 : vector<8x1xf32> to vector<8x32xf32>
    %27 = arith.mulf %17, %26 : vector<8x32xf32>
    %28 = vector.broadcast %6 : vector<1x32xf32> to vector<8x32xf32>
    %29 = arith.mulf %27, %28 : vector<8x32xf32>
    %30 = vector.broadcast %7 : vector<1x32xf32> to vector<8x32xf32>
    %31 = arith.addf %29, %30 : vector<8x32xf32>
    %c0_12 = arith.constant 0 : index
    %c0_13 = arith.constant 0 : index
    %32 = vector.load %arg5[%c0_12, %c0_13] : memref<8x32xf32, #tpu.memory_space<vmem>>, vector<8x32xf32>
    tpu.vector_store %arg5[%c0_12, %c0_13], %31 {strides = array<i32>} : memref<8x32xf32, #tpu.memory_space<vmem>>, vector<8x32xf32>,
    return
  }
  func.func @transform_0(%arg0: i32) -> (i32, i32) {
    %c0_i32 = arith.constant 0 : i32
    %c0_i32_0 = arith.constant 0 : i32
    return %arg0, %c0_i32 : i32, i32
  }
  func.func @transform_1(%arg0: i32) -> (i32, i32) {
    %c0_i32 = arith.constant 0 : i32
    %c0_i32_0 = arith.constant 0 : i32
    return %arg0, %c0_i32 : i32, i32
  }
  func.func @transform_2(%arg0: i32) -> (i32, i32) {
    %c0_i32 = arith.constant 0 : i32
    %c0_i32_0 = arith.constant 0 : i32
    %c0_i32_1 = arith.constant 0 : i32
    return %c0_i32, %c0_i32_0 : i32, i32
  }
  func.func @transform_3(%arg0: i32) -> (i32, i32) {
    %c0_i32 = arith.constant 0 : i32
    %c0_i32_0 = arith.constant 0 : i32
    %c0_i32_1 = arith.constant 0 : i32
    return %c0_i32, %c0_i32_0 : i32, i32
  }
  func.func @transform_4(%arg0: i32) -> (i32, i32) {
    %c0_i32 = arith.constant 0 : i32
    %c0_i32_0 = arith.constant 0 : i32
    return %arg0, %c0_i32 : i32, i32
  }
}

</mosaic_0001>

<bundles_post_ra>
// kernel: tpu_custom_call.1
= control target key start
LH: loop header
LB: loop body
LE: loop exit
PB: predicated region body
PF: predicated region fallthrough
CT: control target
= control target key end

     0   :  { %s1014_s0 = inlined_call_operand.hbm [shape: f32[16,32], index: 0, kind: input, shape index: {}]   ;;  %s1015_s1 = inlined_call_operand.hbm [shape: f32[16,32], index: 1, kind: input, shape index: {}]   ;;  %s1016_s2 = inlined_call_operand.hbm [shape: bf16[32,32], index: 2, kind: input, shape index: {}]   ;;  %s1017_s3 = inlined_call_operand.vmem [shape: f32[8,32], index: 3, kind: input, shape index: {}]   ;;  %s1018_s4 = inlined_call_operand.hbm [shape: f32[16,32], index: 4, kind: output, shape index: {}]  }
   0x1   :  { %1023 = sst [smem:[#allocation13_spill]] %s1016_s2 }
   0x2   :  { %9 = vsyncpa [#allocation3], 0 }
   0x3   :  { %11 = vsyncpa [#allocation3 + $0x1], 0 }
   0x4   :  { %12 = vsyncpa [#allocation6], 0 }
   0x5   :  { %14 = vsyncpa [#allocation6 + $0x1], 0 }
   0x6   :  { %15 = vsyncpa [#allocation4], 0 }
   0x7   :  { %17 = vsyncpa [#allocation4 + $0x1], 0  ;;  %s772_s15 = smov 0   ;;  %s774_s16 = smov 0  }
   0x8   :  { %s776_s17 = smov 0   ;;  %s778_s18 = smov 0  }
   0x9 LB: > { %s793_s19 = sadd.s32 4294967295, %s737_s18   ;;  %s474_s20 = sadd.s32 4294967294, %s737_s18   ;;  %s737_s18 = sphi %s778_s18, %s1042_s18   ;;  %s733_s17 = sphi %s776_s17, %s1041_s17   ;;  %s729_s16 = sphi %s774_s16, %s1040_s16   ;;  %s725_s15 = sphi %s772_s15, %s1039_s15  }
   0xa   : > { %p43_p0 = scmp.ne.s32.totalorder %s729_s16, %s725_s15  ;;  %p1019_p1 = scmp.eq.s32.totalorder %s793_s19, 0 }
   0xb   : > { %p141_p3 = scmp.eq.s32.totalorder %s474_s20, 1  ;;  %p475_p5 = scmp.ge.s32.totalorder %s737_s18, 1 }
   0xc   : > { %p802_p4 = por %p1019_p1, %p43_p0  ;;  %p148_p7 = scmp.lt.s32.totalorder %s737_s18, 3 }
   0xd   : > { %p807_p6 = por %p141_p3, %p43_p0  ;;  %s739_s24 = smov [#allocation7]  }
   0xe   : > { %s1024_s21 = scalar_select %p802_p4, 1, 0 }
   0xf   : > { %s1025_s22 = scalar_select %p807_p6, 1, 0 }
  0x10   : > { %p812_p8 = pnand %p475_p5, %p148_p7  ;;  %s160_s25 = sshll.u32 %s739_s24, 4  ;;  %s816_s25 = int_to_ptr.vmem [resolvable:$true] %s160_s25 }
  0x11   : > { %s828_s27 = sadd.s32 1, %s737_s18   ;;  %s30_s28 = sadd.s32 1, %s733_s17 }
  0x12   : > { %s1026_s23 = scalar_select %p812_p8, 1, 0 }
  0x13   : > { %p515_p9 = pneg %p812_p8  ;;  %s27_s29 = ssub.s32 %s737_s18, %s828_s27 }
  0x14   : > { %s1028_s2 = sld [smem:[#allocation13_spill]] }
  0x15   : > { %p823_p11 = pnand %p515_p9, %p1019_p1 }
  0x17   : > { %p577_p13 = pneg %p823_p11 }
  0x1a   : > { %s575_s6 = scalar_lea.hbm %s1028_s2, 256 }
  0x1b   : > { %p576_p12 = scmp.ne.s32.totalorder %s1028_s2, %s575_s6  ;;  %p582_p5 = scmp.lt.u32.totalorder %s575_s6, %s1028_s2 }
  0x1d   : > { %p578_p0 = pnand %p577_p13, %p576_p12 }
  0x1f   : > { %p579_p3 = pneg %p578_p0 }
  0x21   : > { %p584_p7 = pnand %p582_p5, %p579_p3 }
  0x23   : > { %587 = shalt.err (!%p584_p7)
}
  0x24   : > { %s588_s11 = scalar_lea.vmem %s816_s25, 256  ;;  %p596_p2 = scmp.lt.s32.totalorder %s816_s25, %s816_s25 }
  0x25   : > { %p589_p9 = scmp.ne.s32.totalorder %s816_s25, %s588_s11  ;;  %p597_p6 = scmp.lt.s32.totalorder %s588_s11, %s588_s11 }
  0x27   : > { %p591_p10 = pnand %p589_p9, %p577_p13  ;;  %p598_p4 = por %p597_p6, %p596_p2 }
  0x29   : > { %p592_p1 = pneg %p591_p10 }
  0x2b   : > { %p599_p8 = pnand %p598_p4, %p592_p1 }
  0x2d   : > { %602 = shalt.err (!%p599_p8)
}
  0x2e   : > { %s740_s12 = smov 64   ;;  %s741_s13 = smov 4  }
  0x2f   : > { %518 = dma.hbm_to_vmem [thread:$0]  (!%p823_p11), %s1028_s2, 256, %s816_s25, [#allocation6], %s740_s12, %s740_s12, %s741_s13  }
  0x30   : > { %p28_p2 = scmp.eq.s32.totalorder %s27_s29, 0  ;;  %p37_p1 = scmp.ne.s32.totalorder %s733_s17, %s729_s16 }
  0x31   : > { %p38_p4 = scmp.eq.s32.totalorder %s737_s18, 0  ;;  %p531_p6 = scmp.lt.s32.totalorder %s737_s18, 2 }
  0x32   : > { %s859_s24 = scalar_select %p28_p2, %s733_s17, %s30_s28  }
  0x33   : > { %p39_p8 = por %p38_p4, %p37_p1  ;;  %p1029_p10 = scmp.eq.s32.totalorder %s793_s19, 1 }
  0x34   : > { %s177_s5 = sand.u32 1, %s733_s17   ;;  %s479_s6 = sshll.u32 %s737_s18, 7 }
  0x35   : > { %p863_p12 = por %p1029_p10, %p37_p1  ;;  %s869_s7 = sshll.u32 %s177_s5, 3 }
  0x36   : > { %s874_s25 = scalar_lea.hbm %s1014_s0, %s479_s6  ;;  %s181_s28 = scalar_lea.vmem [#allocation2], %s869_s7 }
  0x37   : > { %s1030_s30 = scalar_select %p863_p12, 1, 0 }
  0x38   : > { %s188_s29 = sshll.u32 %s181_s28, 4  ;;  %p877_p11 = pnand %p531_p6, %p39_p8  ;;  %s881_s29 = int_to_ptr.vmem [resolvable:$true] %s188_s29 }
  0x39   : > { %s886_s12 = scalar_lea.hbm %s1015_s1, %s479_s6  ;;  %s178_s13 = scalar_lea.sflag [#allocation3], %s177_s5 }
  0x3a   : > { %s603_s14 = scalar_lea.hbm %s874_s25, 128  ;;  %p605_p0 = pneg %p877_p11 }
  0x3b   : > { %p604_p13 = scmp.ne.s32.totalorder %s874_s25, %s603_s14  ;;  %s608_s8 = scalar_lea.hbm %s1014_s0, 256 }
  0x3c   : > { %p609_p7 = scmp.lt.u32.totalorder %s874_s25, %s1014_s0  ;;  %p610_p9 = scmp.lt.u32.totalorder %s608_s8, %s603_s14 }
  0x3d   : > { %p606_p3 = pnand %p605_p0, %p604_p13  ;;  %p612_p1 = scmp.lt.u32.totalorder %s603_s14, %s874_s25 }
  0x3e   : > { %p611_p2 = por %p610_p9, %p609_p7 }
  0x3f   : > { %p607_p5 = pneg %p606_p3 }
  0x40   : > { %p613_p4 = por %p612_p1, %p611_p2 }
  0x42   : > { %p614_p6 = pnand %p613_p4, %p607_p5 }
  0x44   : > { %617 = shalt.err (!%p614_p6)
}
  0x45   : > { %s618_s5 = scalar_lea.vmem %s881_s29, 128  ;;  %s742_s6 = smov [#allocation2]  }
  0x46   : > { %p619_p8 = scmp.ne.s32.totalorder %s881_s29, %s618_s5  ;;  %s623_s10 = sshll.u32 %s742_s6, 4  ;;  %s624_s10 = int_to_ptr.vmem [resolvable:$false] %s623_s10 }
  0x47   : > { %s625_s2 = scalar_lea.vmem %s624_s10, 256  ;;  %p626_p3 = scmp.lt.s32.totalorder %s881_s29, %s624_s10 }
  0x48   : > { %p621_p10 = pnand %p619_p8, %p605_p0  ;;  %p627_p7 = scmp.lt.s32.totalorder %s625_s2, %s618_s5 }
  0x4a   : > { %p622_p13 = pneg %p621_p10  ;;  %p628_p9 = por %p627_p7, %p626_p3 }
  0x4c   : > { %p629_p2 = pnand %p628_p9, %p622_p13 }
  0x4e   : > { %632 = shalt.err (!%p629_p2)
}
  0x4f   : > { %522 = dma.hbm_to_vmem [thread:$0]  (!%p877_p11), %s874_s25, 128, %s881_s29, %s178_s13  }
  0x50   : > { %s195_s11 = sand.u32 1, %s737_s18   ;;  %s199_s14 = scalar_lea.vmem [#allocation5], %s869_s7 }
  0x51   : > { %s206_s20 = sshll.u32 %s199_s14, 4  ;;  %s196_s26 = scalar_lea.sflag [#allocation6], %s195_s11  ;;  %s207_s20 = int_to_ptr.vmem [resolvable:$true] %s206_s20 }
  0x52   : > { %s633_s8 = scalar_lea.hbm %s886_s12, 128  ;;  %s638_s6 = scalar_lea.hbm %s1015_s1, 256 }
  0x53   : > { %p634_p5 = scmp.ne.s32.totalorder %s886_s12, %s633_s8  ;;  %p639_p6 = scmp.lt.u32.totalorder %s886_s12, %s1015_s1 }
  0x54   : > { %p640_p8 = scmp.lt.u32.totalorder %s638_s6, %s633_s8  ;;  %p642_p13 = scmp.lt.u32.totalorder %s633_s8, %s886_s12 }
  0x55   : > { %p636_p1 = pnand %p634_p5, %p605_p0 }
  0x56   : > { %p641_p10 = por %p640_p8, %p639_p6 }
  0x57   : > { %p637_p4 = pneg %p636_p1 }
  0x58   : > { %p643_p3 = por %p642_p13, %p641_p10 }
  0x5a   : > { %p644_p7 = pnand %p643_p3, %p637_p4 }
  0x5c   : > { %647 = shalt.err (!%p644_p7)
}
  0x5d   : > { %s648_s7 = scalar_lea.vmem %s207_s20, 128  ;;  %s743_s25 = smov [#allocation5]  }
  0x5e   : > { %p649_p9 = scmp.ne.s32.totalorder %s207_s20, %s648_s7  ;;  %s653_s29 = sshll.u32 %s743_s25, 4  ;;  %s654_s29 = int_to_ptr.vmem [resolvable:$false] %s653_s29 }
  0x5f   : > { %s655_s13 = scalar_lea.vmem %s654_s29, 256  ;;  %p656_p1 = scmp.lt.s32.totalorder %s207_s20, %s654_s29 }
  0x60   : > { %p651_p2 = pnand %p649_p9, %p605_p0  ;;  %p657_p12 = scmp.lt.s32.totalorder %s655_s13, %s648_s7 }
  0x62   : > { %p652_p5 = pneg %p651_p2  ;;  %p658_p6 = por %p657_p12, %p656_p1 }
  0x64   : > { %p659_p8 = pnand %p658_p6, %p652_p5 }
  0x66   : > { %662 = shalt.err (!%p659_p8)
}
  0x67   : > { %525 = dma.hbm_to_vmem [thread:$0]  (!%p877_p11), %s886_s12, 128, %s207_s20, %s196_s26  }
  0x68   : > { %p1032_p4 = scmp.ne.s32.totalorder %s1026_s23, 0 }
  0x69   : > { %s937_s11 = sand.u32 (!%p1032_p4), 1, %s729_s16   ;;  %p1033_p12 = scmp.ne.s32.totalorder (!%p1032_p4), %s1024_s21, 0 }
  0x6a   : > { %215 = sbr.rel (%p1032_p4) target bundleno = 672 (0x2a0), region = 36  ;;  %s940_s14 = sshll.u32 (!%p1032_p4), %s937_s11, 3 }
  0x6b   : > { %s218_s8 = scalar_lea.sflag (!%p1032_p4), [#allocation3], %s937_s11  ;;  %s221_s28 = scalar_lea.vmem (!%p1032_p4), [#allocation2], %s940_s14 }
  0x71   : > { %708 = dma.done.wait (%p1033_p12), %s218_s8, 128  }
  0x72   : > { %710 = vsyncadd (%p1033_p12), %s218_s8, 4294967168  ;;  %s226_s23 = sand.u32 1, %s793_s19   ;;  %s230_s12 = scalar_lea.vmem [#allocation5], %s940_s14 }
  0x73   : > { %s227_s9 = scalar_lea.sflag [#allocation6], %s226_s23 }
  0x74   : > { %712 = dma.done.wait (%p1033_p12), %s227_s9, 128  }
  0x75   : > { %714 = vsyncadd (%p1033_p12), %s227_s9, 4294967168  ;;  %p1034_p11 = scmp.eq.s32.totalorder %s793_s19, 0 }
  0x77   : > { %716 = dma.done.wait (%p1034_p11), [#allocation6], 256   ;;  %p1035_p0 = pmov %p1034_p11 }
  0x78   : > { %v744_v0 = vmov 0.0   ;;  %vm745_vm0 = vmmov 0   ;;  %v571_v1 = vld [vmem:[#allocation7] sm:$0xff]   ;;  %v572_v2 = vld [vmem:[#allocation7 + $0x8] sm:$0xff]   ;;  %vm288_vm1 = vcmask 261120   ;;  %v272_v5 = vlaneseq  ;;  %v332_v11 = vld [vmem:[%s230_s12] sm:$0xff] }
  0x79   : > { %718 = vsyncadd (%p1035_p0), [#allocation6], 4294967040  ;;  %497 = vmatprep.subr.bf16.mxu0 %v744_v0  ;;  %501 = vmatprep.mubr.msk.bf16.mxu0 %vm745_vm0, %v744_v0  ;;  %v265_v3 = vld [vmem:[%s221_s28] sm:$0xff]  ;;  %s491_s26 = sshll.u32 %s793_s19, 7  ;;  %s263_s5 = scalar_lea.vmem [#allocation8], %s940_s14 }
  0x7a   : > { %498 = vmatpush3.bf16.msra.mxu0 %v571_v1  ;;  %v266_v4 = vpack.c.bf16 %v265_v3, %v265_v3  ;;  %v273_v6 = vshrl.u32 %v272_v5, 7  ;;  %v271_v8 = vld [vmem:[%s1017_s3] sm:$0xff]  ;;  %s372_s6 = sshll.u32 %s263_s5, 4  ;;  %s969_s7 = scalar_lea.hbm %s1018_s4, %s491_s26  ;;  %s971_s6 = int_to_ptr.vmem [resolvable:$true] %s372_s6 }
  0x7b   : > { %499 = vmatprep.subr.bf16.mxu0 %v744_v0  ;;  %s359_s25 = scalar_lea.sflag [#allocation4], %s937_s11  ;;  %s663_s29 = scalar_lea.vmem %s971_s6, 128 }
  0x7c   : > { %v274_v7 = vsub.s32 0, %v273_v6  ;;  %v349_v26 = vsub.s32 1, %v273_v6  ;;  %v354_v27 = vsub.s32 2, %v273_v6  ;;  %p664_p10 = scmp.ne.s32.totalorder %s971_s6, %s663_s29  ;;  %p1036_p13 = scmp.ne.s32.totalorder %s1030_s30, 0 }
  0x7d   : > { %s746_s19 = smov [#allocation8]  }
  0x7e   : > { %500 = vmatpush3.bf16.msra.mxu0 %v572_v2  ;;  %v275_v9 = vrot.slane %v271_v8, %v274_v7  ;;  %v350_v28 = vrot.slane %v271_v8, %v349_v26  ;;  %v355_v30 = vrot.slane %v271_v8, %v354_v27  ;;  %p665_p3 = pnand %p664_p10, %p1036_p13  ;;  %s667_s13 = sshll.u32 %s746_s19, 4  ;;  %s668_s13 = int_to_ptr.vmem [resolvable:$false] %s667_s13 }
  0x7f   : > { %s669_s14 = scalar_lea.vmem %s668_s13, 256  ;;  %p670_p9 = scmp.lt.s32.totalorder %s971_s6, %s668_s13 }
  0x80   : > { %p666_p7 = pneg %p665_p3  ;;  %p671_p2 = scmp.lt.s32.totalorder %s669_s14, %s663_s29 }
  0x81   : > { %502 = vmatmul.mubr.msk.bf16.vlgmr.msra.gmra.mrb[0].mxu0 %vm288_vm1, %v266_v4 }
  0x82   : > { %p672_p5 = por %p671_p2, %p670_p9 }
  0x84   : > { %p673_p1 = pnand %p672_p5, %p666_p7 }
 0x154   : > { %v326_v10 = vpop.f32.mrb[0].mxu0 }
 0x155   : > { %v327_v12 = vadd.f32 %v326_v10, %v275_v9  ;;  %v503_v13 = vpop.f32.mrb[1].mxu0 }
 0x156   : > { %v329_v14 = vpop.f32.mrb[2].mxu0 }
 0x157   : > { %v504_v15 = vpop.f32.mrb[3].mxu0  ;;  %v333_v16 = vadd.f32 %v332_v11, %v327_v12 }
 0x159   : > { %v334_v17 = vsel %vm288_vm1, %v333_v16, 0.0 }
 0x15a   : > { %335 = vadd.xlane.f32.xlu0 %v334_v17 }
 0x1e7   : > { %v336_v18 = vpop.xlane.xlu0 %335 }
 0x1e8   : > { %v337_v19 = vmul.f32 0.03125, %v336_v18 }
 0x1ea   : > { %v338_v20 = vsub.f32 %v333_v16, %v337_v19 }
 0x1ec   : > { %v339_v21 = vmul.f32 %v338_v20, %v338_v20 }
 0x1ee   : > { %v340_v22 = vsel %vm288_vm1, %v339_v21, 0.0 }
 0x1ef   : > { %341 = vadd.xlane.f32.xlu0 %v340_v22 }
 0x27c   : > { %v342_v23 = vpop.xlane.xlu0 %341 }
 0x27d   : > { %v343_v24 = vmul.f32 0.03125, %v342_v23 }
 0x27f   : > { %v344_v25 = vadd.f32 1e-12, %v343_v24 }
 0x281   : > { %573 = vrsqrt.f32 %v344_v25 }
 0x28b   : > { %v574_v29 = vpop.eup %573 }
 0x28c   : > { %v346_v31 = vmul.f32 %v574_v29, %v338_v20 }
 0x28e   : > { %v351_v32 = vmul.f32 %v350_v28, %v346_v31 }
 0x290   : > { %v356_v33 = vadd.f32 %v355_v30, %v351_v32 }
 0x292   : > { %357 = vst.msk [vmem:[%s263_s5] sm:$0xff] %vm288_vm1, %v356_v33 }
 0x293   : > { %676 = shalt.err (!%p673_p1)
}
 0x294   : > { %s677_s11 = scalar_lea.hbm %s969_s7, 128  ;;  %s681_s23 = scalar_lea.hbm %s1018_s4, 256 }
 0x295   : > { %p678_p6 = scmp.ne.s32.totalorder %s969_s7, %s677_s11  ;;  %p682_p12 = scmp.lt.u32.totalorder %s969_s7, %s1018_s4 }
 0x296   : > { %p683_p11 = scmp.lt.u32.totalorder %s681_s23, %s677_s11  ;;  %p685_p10 = scmp.lt.u32.totalorder %s677_s11, %s969_s7 }
 0x297   : > { %p679_p8 = pnand %p678_p6, %p1036_p13 }
 0x298   : > { %p684_p0 = por %p683_p11, %p682_p12 }
 0x299   : > { %p680_p4 = pneg %p679_p8 }
 0x29a   : > { %p686_p3 = por %p685_p10, %p684_p0 }
 0x29c   : > { %p687_p7 = pnand %p686_p3, %p680_p4 }
 0x29e   : > { %690 = shalt.err (!%p687_p7)
}
 0x29f   : > { %513 = dma.vmem_to_hbm [thread:$0]  (%p1036_p13), %s971_s6, 128, %s969_s7, %s359_s25  }
 0x2a0 PF: > { %s384_s21 = sand.u32 1, %s725_s15   ;;  %p1037_p9 = scmp.ne.s32.totalorder %s1025_s22, 0 }
 0x2a1   : > { %p1038_p2 = scmp.ge.s32.totalorder %s737_s18, 2  ;;  %s385_s20 = scalar_lea.sflag [#allocation4], %s384_s21 }
 0x2a3   : > { %p527_p5 = pnand %p1038_p2, %p1037_p9 }
 0x2a5   : > { %720 = dma.done.wait (!%p527_p5), %s385_s20, 128  }
 0x2a6   : > { %722 = vsyncadd (!%p527_p5), %s385_s20, 4294967168  ;;  %p20_p1 = scmp.ge.s32.totalorder %s828_s27, 4   ;;  %s1039_s15 = smov %s729_s16 }
 0x2a7   : > { %s1040_s16 = smov %s733_s17  ;;  %s1041_s17 = smov %s859_s24 }
 0x2a8   : > { %s1042_s18 = smov %s828_s27  ;;  %22 = sbr.rel (!%p20_p1) target bundleno = 9 (0x9), region = 98 }
 0x2af   :  { %390 = vsyncpa [#allocation3], 1 }
 0x2b0   :  { %392 = vsyncpa [#allocation3 + $0x1], 1 }
 0x2b1   :  { %393 = vsyncpa [#allocation6], 1 }
 0x2b2   :  { %395 = vsyncpa [#allocation6 + $0x1], 1 }
 0x2b3   :  { %396 = vsyncpa [#allocation4], 1 }
 0x2b4   :  { %398 = vsyncpa [#allocation4 + $0x1], 1 }

</bundles_post_ra>
